<compile_context>
chip_gen: v7x
topology: tpu7x:2x2x1
jax: 0.10.0
libtpu: 0.0.40
codegen_flags: <defaults>
</compile_context>

<pallas_src>
import jax
import jax.numpy as jnp
from jax.experimental import pallas as pl
from jax.experimental.pallas import tpu as pltpu

NUM_INPUTS = 784      # 1 * 28 * 28
NUM_OUTPUTS = 10

N_PAD = 128           # lane-dense output / weight width
TM_MAX = 512          # max batch-tile rows (fits v5e's 16 MiB scoped VMEM
                      # with double buffering: 2*(512*784*4) + 2*(512*128*4)
                      # + 784*128*2  ~= 4 MiB)


def _linear_kernel(x_ref, w_ref, b_ref, o_ref):
    # x_ref: (TM, 784) f32     w_ref: (784, 128) bf16
    # b_ref: (1, 128) f32      o_ref: (TM, 128) f32
    x_bf16 = x_ref[...].astype(jnp.bfloat16)          # VPU cast, in-kernel
    y = jnp.dot(x_bf16, w_ref[...], preferred_element_type=jnp.float32)
    o_ref[...] = y + b_ref[...]                        # (1,128) broadcasts


def prepare_params(w, b):
    """One-time parameter prep (hoisted out of the per-call forward path).

    w: (10, 784) f32, b: (10,) f32  ->  (784, 128) bf16, (1, 128) f32.
    """
    w_t = jnp.pad(w.T.astype(jnp.bfloat16),
                  ((0, 0), (0, N_PAD - NUM_OUTPUTS)))
    b_p = jnp.pad(b.astype(jnp.float32).reshape(1, NUM_OUTPUTS),
                  ((0, 0), (0, N_PAD - NUM_OUTPUTS)))
    return w_t, b_p


def net_forward(x, w_t, b_p):
    """x: (B, C, H, W) f32; (w_t, b_p) from prepare_params. Returns (B, 10) f32."""
    batch = x.shape[0]
    x2d = x.reshape(batch, -1)                         # x.view(x.shape[0], -1)
    assert x2d.shape[1] == NUM_INPUTS

    # Pad batch to a multiple of 16 (full bf16 sublane pairs), then to a
    # multiple of the batch tile so the grid divides evenly.
    b_pad16 = ((batch + 15) // 16) * 16
    tm = min(TM_MAX, b_pad16)
    b_pad = ((b_pad16 + tm - 1) // tm) * tm
    if b_pad != batch:
        x2d = jnp.pad(x2d, ((0, b_pad - batch), (0, 0)))

    grid = (b_pad // tm,)

    out = pl.pallas_call(
        _linear_kernel,
        out_shape=jax.ShapeDtypeStruct((b_pad, N_PAD), jnp.float32),
        grid=grid,
        in_specs=[
            # x: one batch tile per grid step (full 784-wide K block).
            pl.BlockSpec((tm, NUM_INPUTS), lambda i: (i, 0)),
            # weight: full-resident, same block every step.
            pl.BlockSpec((NUM_INPUTS, N_PAD), lambda i: (0, 0)),
            # bias: tiny full-resident row.
            pl.BlockSpec((1, N_PAD), lambda i: (0, 0)),
        ],
        out_specs=pl.BlockSpec((tm, N_PAD), lambda i: (i, 0)),
        compiler_params=pltpu.CompilerParams(
            dimension_semantics=("parallel",)),
        cost_estimate=pl.CostEstimate(
            flops=2 * batch * NUM_INPUTS * NUM_OUTPUTS,
            transcendentals=0,
            bytes_accessed=(batch * NUM_INPUTS * 4          # x (f32, read once)
                            + NUM_INPUTS * N_PAD * 2        # weight (bf16)
                            + N_PAD * 4                     # bias
                            + b_pad * N_PAD * 4),           # output
        ),
    )(x2d, w_t, b_p)

    # Strip lane/sublane padding back off to match the module's (B, 10) output.
    return out[:batch, :NUM_OUTPUTS]


if __name__ == "__main__":
    key = jax.random.PRNGKey(0)
    kx, kw, kb = jax.random.split(key, 3)

    # Small MNIST-like input consistent with num_inputs = 784 = 1*28*28.
    batch = 16
    x = jax.random.normal(kx, (batch, 1, 28, 28), dtype=jnp.float32)

    # Deterministic parameter init (PyTorch Linear default-ish uniform range).
    bound = 1.0 / (NUM_INPUTS ** 0.5)
    w = jax.random.uniform(kw, (NUM_OUTPUTS, NUM_INPUTS), jnp.float32,
                           minval=-bound, maxval=bound)
    b = jax.random.uniform(kb, (NUM_OUTPUTS,), jnp.float32,
                           minval=-bound, maxval=bound)

    # One-time parameter prep, outside the per-call forward path.
    w_t, b_p = prepare_params(w, b)

    fwd = jax.jit(net_forward)
    y = jax.block_until_ready(fwd(x, w_t, b_p))

    # Cross-check against plain-JAX f32 reference (bf16 weight -> loose tol).
    y_ref = x.reshape(batch, -1) @ w.T + b
    assert y.shape == (batch, NUM_OUTPUTS)
    assert jnp.allclose(y, y_ref, atol=5e-2, rtol=5e-2)

    print("KERNEL_OK")
</pallas_src>

<mosaic_0001>
module attributes {stable_mosaic.version = 11 : i64} {
  func.func @_linear_kernel(%arg0: i32, %arg1: memref<16x784xf32, #tpu.memory_space<vmem>>, %arg2: memref<784x128xbf16, #tpu.memory_space<vmem>>, %arg3: memref<1x128xf32, #tpu.memory_space<vmem>>, %arg4: memref<16x128xf32, #tpu.memory_space<vmem>>) attributes {dimension_semantics = [#tpu.dimension_semantics<parallel>], iteration_bounds = array<i64: 1>, scalar_prefetch = 0 : i64, scratch_operands = 0 : i64, tpu.core_type = #tpu.core_type<tc>, window_params = [{transform_indices = @transform_0, window_bounds = array<i64: 16, 784>}, {pipeline_mode = #tpu.pipeline_mode<synchronous>, transform_indices = @transform_1, window_bounds = array<i64: 784, 128>}, {pipeline_mode = #tpu.pipeline_mode<synchronous>, transform_indices = @transform_2, window_bounds = array<i64: 1, 128>}, {transform_indices = @transform_3, window_bounds = array<i64: 16, 128>}]} {
    %c0 = arith.constant 0 : index
    %c0_0 = arith.constant 0 : index
    %0 = vector.load %arg1[%c0, %c0_0] : memref<16x784xf32, #tpu.memory_space<vmem>>, vector<16x784xf32>
    %1 = arith.truncf %0 : vector<16x784xf32> to vector<16x784xbf16>
    %c0_1 = arith.constant 0 : index
    %c0_2 = arith.constant 0 : index
    %2 = vector.load %arg2[%c0_1, %c0_2] : memref<784x128xbf16, #tpu.memory_space<vmem>>, vector<784x128xbf16>
    %cst = arith.constant dense<0.000000e+00> : vector<16x128xf32>
    %3 = tpu.matmul %1, %2, %cst {dimension_numbers = #tpu.dot_dimension_numbers<[1], [0], [0], [1], [0, 0, 1, 1], [], []>} : vector<16x784xbf16>, vector<784x128xbf16>, vector<16x128xf32> -> vector<16x128xf32>
    %c0_3 = arith.constant 0 : index
    %c0_4 = arith.constant 0 : index
    %4 = vector.load %arg3[%c0_3, %c0_4] : memref<1x128xf32, #tpu.memory_space<vmem>>, vector<1x128xf32>
    %5 = vector.broadcast %4 : vector<1x128xf32> to vector<16x128xf32>
    %6 = arith.addf %3, %5 : vector<16x128xf32>
    %c0_5 = arith.constant 0 : index
    %c0_6 = arith.constant 0 : index
    %7 = vector.load %arg4[%c0_5, %c0_6] : memref<16x128xf32, #tpu.memory_space<vmem>>, vector<16x128xf32>
    tpu.vector_store %arg4[%c0_5, %c0_6], %6 {strides = array<i32>} : memref<16x128xf32, #tpu.memory_space<vmem>>, vector<16x128xf32>,
    return
  }
  func.func @transform_0(%arg0: i32) -> (i32, i32) {
    %c0_i32 = arith.constant 0 : i32
    %c0_i32_0 = arith.constant 0 : i32
    return %arg0, %c0_i32 : i32, i32
  }
  func.func @transform_1(%arg0: i32) -> (i32, i32) {
    %c0_i32 = arith.constant 0 : i32
    %c0_i32_0 = arith.constant 0 : i32
    %c0_i32_1 = arith.constant 0 : i32
    return %c0_i32, %c0_i32_0 : i32, i32
  }
  func.func @transform_2(%arg0: i32) -> (i32, i32) {
    %c0_i32 = arith.constant 0 : i32
    %c0_i32_0 = arith.constant 0 : i32
    %c0_i32_1 = arith.constant 0 : i32
    return %c0_i32, %c0_i32_0 : i32, i32
  }
  func.func @transform_3(%arg0: i32) -> (i32, i32) {
    %c0_i32 = arith.constant 0 : i32
    %c0_i32_0 = arith.constant 0 : i32
    return %arg0, %c0_i32 : i32, i32
  }
}

</mosaic_0001>

<bundles_post_ra>
// kernel: net_forward.1
= control target key start
LH: loop header
LB: loop body
LE: loop exit
PB: predicated region body
PF: predicated region fallthrough
CT: control target
= control target key end

     0   :  { %v825_v43 = vmov 0.0   ;;  %vm826_vm0 = vmmov 0   ;;  %vm436_vm1 = vcmask 130048   ;;  %s1054_s0 = inlined_call_operand.vmem [shape: f32[16,784], index: 0, kind: input, shape index: {}]   ;;  %s1055_s1 = inlined_call_operand.vmem [shape: bf16[784,128], index: 1, kind: input, shape index: {}]   ;;  %s1056_s2 = inlined_call_operand.vmem [shape: f32[1,128], index: 2, kind: input, shape index: {}]   ;;  %s1057_s3 = inlined_call_operand.hbm [shape: f32[16,128], index: 3, kind: output, shape index: {}]  }
   0x1   :  { %v752_v0 = vld [vmem:[%s1055_s1 + $0x40] sm:$0xff]   ;;  %v756_v4 = vld [vmem:[%s1055_s1 + $0x48] sm:$0xff]   ;;  %v760_v8 = vld [vmem:[%s1055_s1 + $0x50] sm:$0xff]  }
   0x2   :  { %v753_v1 = vld [vmem:[%s1055_s1] sm:$0xff]   ;;  %673 = vmatprep.subr.bf16.mxu0 %v752_v0  ;;  %v757_v5 = vld [vmem:[%s1055_s1 + $0x8] sm:$0xff]   ;;  %v761_v9 = vld [vmem:[%s1055_s1 + $0x10] sm:$0xff]  }
   0x3   :  { %v754_v2 = vld [vmem:[%s1055_s1 + $0xc0] sm:$0xff]   ;;  %674 = vmatpush3.bf16.msra.mxu0 %v753_v1  ;;  %v758_v6 = vld [vmem:[%s1055_s1 + $0xc8] sm:$0xff]   ;;  %v762_v10 = vld [vmem:[%s1055_s1 + $0xd0] sm:$0xff]  }
   0x4   :  { %v755_v3 = vld [vmem:[%s1055_s1 + $0x80] sm:$0xff]   ;;  %695 = vmatprep.subr.bf16.mxu1 %v754_v2  ;;  %675 = vmatprep.subr.bf16.mxu0 %v756_v4  ;;  %v759_v7 = vld [vmem:[%s1055_s1 + $0x88] sm:$0xff]   ;;  %v763_v11 = vld [vmem:[%s1055_s1 + $0x90] sm:$0xff]  }
   0x5   :  { %696 = vmatpush3.bf16.msra.mxu1 %v755_v3  ;;  %v764_v12 = vld [vmem:[%s1055_s1 + $0x58] sm:$0xff]   ;;  %v768_v16 = vld [vmem:[%s1055_s1 + $0x60] sm:$0xff]   ;;  %v772_v20 = vld [vmem:[%s1055_s1 + $0x68] sm:$0xff]  }
   0x6   :  { %697 = vmatprep.subr.bf16.mxu1 %v758_v6  ;;  %v765_v13 = vld [vmem:[%s1055_s1 + $0x18] sm:$0xff]   ;;  %v769_v17 = vld [vmem:[%s1055_s1 + $0x20] sm:$0xff]   ;;  %v773_v21 = vld [vmem:[%s1055_s1 + $0x28] sm:$0xff]  }
   0x7   :  { %676 = vmatpush3.bf16.msra.mxu0 %v757_v5  ;;  %v766_v14 = vld [vmem:[%s1055_s1 + $0xd8] sm:$0xff]   ;;  %v770_v18 = vld [vmem:[%s1055_s1 + $0xe0] sm:$0xff]   ;;  %v774_v22 = vld [vmem:[%s1055_s1 + $0xe8] sm:$0xff]  }
   0x8   :  { %677 = vmatprep.subr.bf16.mxu0 %v760_v8  ;;  %v767_v15 = vld [vmem:[%s1055_s1 + $0x98] sm:$0xff]   ;;  %v771_v19 = vld [vmem:[%s1055_s1 + $0xa0] sm:$0xff]   ;;  %v775_v23 = vld [vmem:[%s1055_s1 + $0xa8] sm:$0xff]  }
   0x9   :  { %698 = vmatpush3.bf16.msra.mxu1 %v759_v7  ;;  %v776_v24 = vld [vmem:[%s1055_s1 + $0x70] sm:$0xff]   ;;  %v780_v28 = vld [vmem:[%s1055_s1 + $0x78] sm:$0xff]   ;;  %v17_v31 = vld [vmem:[%s1054_s0 + $0x8] sm:$0xff] }
   0xa   :  { %699 = vmatprep.subr.bf16.mxu1 %v762_v10  ;;  %v777_v25 = vld [vmem:[%s1055_s1 + $0x30] sm:$0xff]   ;;  %v781_v29 = vld [vmem:[%s1055_s1 + $0x38] sm:$0xff]   ;;  %v24_v32 = vld [vmem:[%s1054_s0 + $0x40] sm:$0xff] }
   0xb   :  { %678 = vmatpush3.bf16.msra.mxu0 %v761_v9  ;;  %v778_v26 = vld [vmem:[%s1055_s1 + $0xf0] sm:$0xff]   ;;  %v782_v30 = vld [vmem:[%s1055_s1 + $0xf8] sm:$0xff]   ;;  %v31_v33 = vpack.c.bf16 %v24_v32, %v17_v31  ;;  %v16_v35 = vld [vmem:[%s1054_s0] sm:$0xff] }
   0xc   :  { %679 = vmatprep.subr.bf16.mxu0 %v764_v12  ;;  %v779_v27 = vld [vmem:[%s1055_s1 + $0xb0] sm:$0xff]   ;;  %v783_v34 = vld [vmem:[%s1055_s1 + $0xb8] sm:$0xff]   ;;  %v784_v38 = vld [vmem:[%s1055_s1 + $0x140] sm:$0xff]  }
   0xd   :  { %700 = vmatpush3.bf16.msra.mxu1 %v763_v11  ;;  %v23_v36 = vld [vmem:[%s1054_s0 + $0x38] sm:$0xff]  ;;  %472 = vmatprep.mubr.bf16.mxu0 %v31_v33  ;;  %v26_v40 = vld [vmem:[%s1054_s0 + $0x50] sm:$0xff]  ;;  %v785_v42 = vld [vmem:[%s1055_s1 + $0x100] sm:$0xff]  }
   0xe   :  { %701 = vmatprep.subr.bf16.mxu1 %v766_v14  ;;  %v30_v37 = vpack.c.bf16 %v23_v36, %v16_v35  ;;  %v19_v39 = vld [vmem:[%s1054_s0 + $0x18] sm:$0xff]  ;;  %v18_v44 = vld [vmem:[%s1054_s0 + $0x10] sm:$0xff]  ;;  %v25_v45 = vld [vmem:[%s1054_s0 + $0x48] sm:$0xff] }
   0xf   :  { %680 = vmatpush3.bf16.msra.mxu0 %v765_v13  ;;  %v33_v41 = vpack.c.bf16 %v26_v40, %v19_v39  ;;  %v32_v46 = vpack.c.bf16 %v25_v45, %v18_v44  ;;  %v786_v47 = vld [vmem:[%s1055_s1 + $0x148] sm:$0xff]   ;;  %v788_v49 = vld [vmem:[%s1055_s1 + $0x150] sm:$0xff]   ;;  %v790_v51 = vld [vmem:[%s1055_s1 + $0x158] sm:$0xff]  }
  0x10   :  { %681 = vmatprep.subr.bf16.mxu0 %v768_v16  ;;  %v787_v48 = vld [vmem:[%s1055_s1 + $0x108] sm:$0xff]   ;;  %v789_v50 = vld [vmem:[%s1055_s1 + $0x110] sm:$0xff]   ;;  %v791_v52 = vld [vmem:[%s1055_s1 + $0x118] sm:$0xff]  }
  0x11   :  { %702 = vmatpush3.bf16.msra.mxu1 %v767_v15  ;;  %513 = vmatprep.mubr.bf16.mxu1 %v33_v41  ;;  %v792_v53 = vld [vmem:[%s1055_s1 + $0x160] sm:$0xff]   ;;  %v794_v55 = vld [vmem:[%s1055_s1 + $0x168] sm:$0xff]   ;;  %v22_v61 = vld [vmem:[%s1054_s0 + $0x30] sm:$0xff] }
  0x12   :  { %703 = vmatprep.subr.bf16.mxu1 %v770_v18  ;;  %v793_v54 = vld [vmem:[%s1055_s1 + $0x120] sm:$0xff]   ;;  %v21_v57 = vld [vmem:[%s1054_s0 + $0x28] sm:$0xff] }
  0x13   :  { %682 = vmatpush3.bf16.msra.mxu0 %v769_v17  ;;  %v800_v56 = vld [vmem:[%s1055_s1 + $0x180] sm:$0xff]   ;;  %v795_v58 = vld [vmem:[%s1055_s1 + $0x128] sm:$0xff]  }
  0x14   :  { %683 = vmatprep.subr.bf16.mxu0 %v772_v20  ;;  %v28_v59 = vld [vmem:[%s1054_s0 + $0x60] sm:$0xff]  ;;  %v29_v62 = vld [vmem:[%s1054_s0 + $0x68] sm:$0xff] }
  0x15   :  { %704 = vmatpush3.bf16.msra.mxu1 %v771_v19  ;;  %v35_v60 = vpack.c.bf16 %v28_v59, %v21_v57 }
  0x16   :  { %705 = vmatprep.subr.bf16.mxu1 %v774_v22 }
  0x17   :  { %684 = vmatpush3.bf16.msra.mxu0 %v773_v21 }
  0x18   :  { %685 = vmatprep.subr.bf16.mxu0 %v776_v24 }
  0x19   :  { %706 = vmatpush3.bf16.msra.mxu1 %v775_v23 }
  0x1a   :  { %707 = vmatprep.subr.bf16.mxu1 %v778_v26 }
  0x1b   :  { %686 = vmatpush3.bf16.msra.mxu0 %v777_v25 }
  0x1c   :  { %687 = vmatprep.subr.bf16.mxu0 %v780_v28 }
  0x1d   :  { %708 = vmatpush3.bf16.msra.mxu1 %v779_v27 }
  0x1e   :  { %709 = vmatprep.subr.bf16.mxu1 %v782_v30 }
  0x1f   :  { %688 = vmatpush3.bf16.msra.mxu0 %v781_v29 }
  0x20   :  { %717 = vmatprep.subr.bf16.mxu0 %v784_v38 }
  0x21   :  { %710 = vmatpush3.bf16.msra.mxu1 %v783_v34 }
  0x22   :  { %741 = vmatprep.subr.bf16.mxu1 %v825_v43  ;;  %473 = vmatmul.mubr.bf16.vlgmr.msra.gmra.mrb[0].mxu0 %v30_v37 }
  0x23   :  { %718 = vmatpush3.bf16.msra.mxu0 %v785_v42 }
  0x24   :  { %514 = vmatmul.mubr.bf16.vlgmr.msra.gmra.mrb[0].mxu1 %v32_v46  ;;  %719 = vmatprep.subr.bf16.mxu0 %v786_v47 }
  0x25   :  { %743 = vmatprep.mubr.msk.bf16.mxu1 %vm826_vm0, %v825_v43  ;;  %742 = vmatpush3.bf16.msra.mxu1 %v800_v56 }
  0x27   :  { %720 = vmatpush3.bf16.msra.mxu0 %v787_v48 }
  0x28   :  { %721 = vmatprep.subr.bf16.mxu0 %v788_v49 }
  0x2b   :  { %722 = vmatpush3.bf16.msra.mxu0 %v789_v50 }
  0x2c   :  { %723 = vmatprep.subr.bf16.mxu0 %v790_v51 }
  0x2f   :  { %724 = vmatpush3.bf16.msra.mxu0 %v791_v52 }
  0x30   :  { %725 = vmatprep.subr.bf16.mxu0 %v792_v53 }
  0x33   :  { %726 = vmatpush3.bf16.msra.mxu0 %v793_v54 }
  0x34   :  { %8 = vsyncpa [#allocation3], 0  ;;  %727 = vmatprep.subr.bf16.mxu0 %v794_v55  ;;  %v796_v63 = vld [vmem:[%s1055_s1 + $0x170] sm:$0xff]   ;;  %v36_v0 = vpack.c.bf16 %v29_v62, %v22_v61  ;;  %554 = vmatprep.mubr.bf16.mxu0 %v35_v60  ;;  %v798_v2 = vld [vmem:[%s1055_s1 + $0x178] sm:$0xff]  }
  0x35   :  { %v797_v1 = vld [vmem:[%s1055_s1 + $0x130] sm:$0xff]   ;;  %v799_v3 = vld [vmem:[%s1055_s1 + $0x138] sm:$0xff]   ;;  %v20_v4 = vld [vmem:[%s1054_s0 + $0x20] sm:$0xff] }
  0x36   :  { %744 = vmatmul.mubr.msk.bf16.vlgmr.msra.gmra.mrb[4].mxu1 %vm436_vm1, %v36_v0  ;;  %v27_v5 = vld [vmem:[%s1054_s0 + $0x58] sm:$0xff]  ;;  %v622_v8 = vld [vmem:[%s1056_s2] ss:$0 sm:$0xff]  ;;  %s827_s0 = smov [#allocation2]  }
  0x37   :  { %728 = vmatpush3.bf16.msra.mxu0 %v795_v58  ;;  %v34_v6 = vpack.c.bf16 %v27_v5, %v20_v4  ;;  %s611_s1 = sshll.u32 %s827_s0, 4  ;;  %s612_s1 = int_to_ptr.vmem [resolvable:$true] %s611_s1 }
  0x38   :  { %729 = vmatprep.subr.bf16.mxu0 %v796_v63  ;;  %s801_s2 = scalar_lea.vmem %s612_s1, 256  ;;  %p806_p1 = scmp.lt.s32.totalorder %s612_s1, %s612_s1 }
  0x39   :  { %p802_p0 = scmp.ne.s32.totalorder %s612_s1, %s801_s2  ;;  %p807_p2 = scmp.lt.s32.totalorder %s801_s2, %s801_s2 }
  0x3b   :  { %730 = vmatpush3.bf16.msra.mxu0 %v797_v1  ;;  %p808_p3 = por %p807_p2, %p806_p1 }
  0x3c   :  { %731 = vmatprep.subr.bf16.mxu0 %v798_v2 }
  0x3d   :  { %p809_p4 = pnand %p808_p3, %p802_p0 }
  0x3f   :  { %732 = vmatpush3.bf16.msra.mxu0 %v799_v3 }
  0x42   :  { %555 = vmatmul.mubr.bf16.vlgmr.msra.gmra.mrb[4].mxu0 %v34_v6 }
  0xf5   :  { %v689_v7 = vpop.f32.mrb[0].mxu0 }
  0xf6   :  { %v690_v9 = vpop.f32.mrb[1].mxu0 }
  0xf7   :  { %v691_v10 = vadd.f32 %v690_v9, %v689_v7  ;;  %v692_v11 = vpop.f32.mrb[2].mxu0  ;;  %v711_v12 = vpop.f32.mrb[0].mxu1 }
  0xf8   :  { %v693_v13 = vpop.f32.mrb[3].mxu0  ;;  %v712_v16 = vpop.f32.mrb[1].mxu1 }
  0xf9   :  { %v475_v14 = vadd.f32 %v691_v10, %v622_v8  ;;  %v694_v15 = vadd.f32 %v693_v13, %v692_v11  ;;  %v713_v17 = vadd.f32 %v712_v16, %v711_v12  ;;  %v714_v18 = vpop.f32.mrb[2].mxu1 }
  0xfa   :  { %v715_v20 = vpop.f32.mrb[3].mxu1 }
  0xfb   :  { %v478_v19 = vadd.f32 %v694_v15, %v622_v8  ;;  %v516_v21 = vadd.f32 %v713_v17, %v475_v14  ;;  %v716_v22 = vadd.f32 %v715_v20, %v714_v18 }
  0xfd   :  { %v519_v23 = vadd.f32 %v716_v22, %v478_v19 }
 0x109   :  { %v597_v24 = vpop.f32.mrb[4].mxu1 }
 0x10a   :  { %v745_v25 = vpop.f32.mrb[5].mxu1 }
 0x10b   :  { %v600_v26 = vpop.f32.mrb[6].mxu1 }
 0x10c   :  { %v746_v27 = vpop.f32.mrb[7].mxu1 }
 0x115   :  { %v733_v28 = vpop.f32.mrb[4].mxu0 }
 0x116   :  { %v734_v29 = vpop.f32.mrb[5].mxu0 }
 0x117   :  { %v735_v30 = vadd.f32 %v734_v29, %v733_v28  ;;  %v736_v31 = vpop.f32.mrb[6].mxu0 }
 0x118   :  { %v737_v32 = vpop.f32.mrb[7].mxu0 }
 0x119   :  { %v557_v33 = vadd.f32 %v735_v30, %v516_v21  ;;  %v738_v34 = vadd.f32 %v737_v32, %v736_v31 }
 0x11b   :  { %v598_v35 = vadd.f32 %v597_v24, %v557_v33  ;;  %v560_v36 = vadd.f32 %v738_v34, %v519_v23 }
 0x11d   :  { %604 = vst [vmem:[#allocation2] sm:$0xff] %v598_v35  ;;  %v601_v37 = vadd.f32 %v600_v26, %v560_v36 }
 0x11f   :  { %605 = vst [vmem:[#allocation2 + $0x8] sm:$0xff] %v601_v37 }
 0x120   :  { %812 = shalt.err (!%p809_p4)
}
 0x121   :  { %s813_s7 = scalar_lea.hbm %s1057_s3, 256 }
 0x122   :  { %p814_p5 = scmp.ne.s32.totalorder %s1057_s3, %s813_s7  ;;  %p817_p6 = scmp.lt.u32.totalorder %s813_s7, %s1057_s3 }
 0x124   :  { %p819_p7 = pnand %p817_p6, %p814_p5 }
 0x126   :  { %822 = shalt.err (!%p819_p7)
}
 0x127   :  { %s828_s12 = smov 128   ;;  %s829_s13 = smov 8  }
 0x128   :  { %617 = dma.vmem_to_hbm [thread:$0]  %s612_s1, 256, %s1057_s3, [#allocation3], %s828_s12, %s828_s12, %s829_s13  }
 0x129   :  { %823 = dma.done.wait [#allocation3], 256  }
 0x12a   :  { %824 = vsyncadd [#allocation3], 4294967040 }
 0x12b   :  { %621 = vsyncpa [#allocation3], 1 }

</bundles_post_ra>
